<compile_context>
chip_gen: v6e
topology: v6e:2x2x1
jax: 0.10.0
libtpu: 0.0.40
codegen_flags: <defaults>
</compile_context>

<pallas_src>
import math

import jax
import jax.numpy as jnp
from jax.experimental import pallas as pl
from jax.experimental.pallas import tpu as pltpu

# ---- "config" constants mirrored from the PyTorch module ----
N_COLORS = 3            # config.N_colors
LEAKY_RELU_LEAK = 0.2   # config.LeakyReLU_leak (only used for kaiming init gain)


def _leaky_gain(a: float) -> float:
    # torch.nn.init.calculate_gain('leaky_relu', a)
    return math.sqrt(2.0 / (1.0 + a * a))


def init_params(key, n_colors, out_channels):
    """Matches FromImage.__init__: kaiming_normal_(a=leak, fan_in) weights, zero bias."""
    gain = _leaky_gain(LEAKY_RELU_LEAK)
    fan_in = n_colors * 1 * 1
    w = jax.random.normal(key, (out_channels, n_colors, 1, 1), jnp.float32) * (
        gain / math.sqrt(fan_in)
    )
    b = jnp.zeros((out_channels,), jnp.float32)
    return {"w": w, "b": b}


def prepare_params(params):
    """Parameter-only transforms, done ONCE outside the per-call forward."""
    w = params["w"]                     # (F, C, 1, 1)
    f = w.shape[0]
    w2d = w[:, :, 0, 0]                 # (F, C): out = W @ x_cols
    b2d = params["b"].reshape(f, 1)     # (F, 1): broadcasts over the lane (spatial) axis
    return w2d, b2d


# ---------------------------- Pallas kernel ----------------------------

def _from_image_kernel(x_ref, w_ref, b_ref, o_ref):
    # x_ref: (C, HW_TILE) spatial tile of one batch element, channels on sublanes
    # w_ref: (F, C)       full weight (resident across the grid)
    # b_ref: (F, 1)       bias, broadcast along lanes
    # o_ref: (F, HW_TILE) lane-dense output tile
    o_ref[...] = (
        jnp.dot(w_ref[...], x_ref[...], preferred_element_type=jnp.float32)
        + b_ref[...]
    ).astype(o_ref.dtype)


def _pick_hw_tile(hw, max_tile):
    """Largest tile <= max_tile that divides hw (multiple of 128 or full extent)."""
    if hw <= max_tile:
        return hw                      # full-extent block (allowed even if % 128 != 0)
    t = (max_tile // 128) * 128
    while t >= 128:
        if hw % t == 0:
            return t
        t -= 128
    return 0                           # no clean divisor -> caller pads (rare fallback)


def _from_image_cols(x3, w2d, b2d, hw_tile):
    B, C, HW = x3.shape
    F = w2d.shape[0]
    grid = (B, HW // hw_tile)
    return pl.pallas_call(
        _from_image_kernel,
        out_shape=jax.ShapeDtypeStruct((B, F, HW), jnp.float32),
        grid=grid,
        in_specs=[
            pl.BlockSpec((None, C, hw_tile), lambda b, j: (b, 0, j)),  # spatial tile
            pl.BlockSpec((F, C), lambda b, j: (0, 0)),                 # weight, resident
            pl.BlockSpec((F, 1), lambda b, j: (0, 0)),                 # bias, resident
        ],
        out_specs=pl.BlockSpec((None, F, hw_tile), lambda b, j: (b, 0, j)),
        compiler_params=pltpu.CompilerParams(
            dimension_semantics=("parallel", "parallel"),   # v7x: shard over both TCs
        ),
    )(x3, w2d, b2d)


def from_image_forward(x_nchw, w2d, b2d, *, max_hw_tile=2048):
    """FromImage.forward: 1x1 conv, NCHW in -> NCHW out. No layout ops, only reshapes."""
    B, C, H, W = x_nchw.shape
    F = w2d.shape[0]
    HW = H * W

    x3 = x_nchw.reshape(B, C, HW)          # free reshape (NCHW is already contiguous)

    hw_tile = _pick_hw_tile(HW, max_hw_tile)
    if hw_tile == 0:
        # Pathological spatial size (no multiple-of-128 divisor): pad the lane axis.
        hw_pad = pl.cdiv(HW, 128) * 128
        x3 = jnp.pad(x3, ((0, 0), (0, 0), (0, hw_pad - HW)))
        out3 = _from_image_cols(x3, w2d, b2d, min(hw_pad, max_hw_tile)
                                if hw_pad <= max_hw_tile else 128)
        out3 = out3[:, :, :HW]
    else:
        out3 = _from_image_cols(x3, w2d, b2d, hw_tile)

    return out3.reshape(B, F, H, W)


# ------------------------------- reference -------------------------------

def from_image_reference(x_nchw, params):
    """Pure-JAX reference (full-precision einsum) for correctness checking."""
    w = params["w"][:, :, 0, 0]  # (F, C)
    y = jnp.einsum(
        "bchw,fc->bfhw", x_nchw, w, precision=jax.lax.Precision.HIGHEST
    )
    return y + params["b"][None, :, None, None]


# --------------------------------- main ----------------------------------

if __name__ == "__main__":
    key = jax.random.PRNGKey(0)
    kp, kx = jax.random.split(key)

    OUT_CHANNELS = 32
    B, H, W = 2, 16, 16

    params = init_params(kp, N_COLORS, OUT_CHANNELS)
    # Parameter-only transforms are computed once, outside the jitted forward.
    w2d, b2d = prepare_params(params)

    x = jax.random.normal(kx, (B, N_COLORS, H, W), jnp.float32)

    fwd = jax.jit(from_image_forward, static_argnames=("max_hw_tile",))
    out = fwd(x, w2d, b2d)
    out = jax.block_until_ready(out)

    ref = from_image_reference(x, params)
    assert out.shape == (B, OUT_CHANNELS, H, W), f"unexpected output shape {out.shape}"
    if not jnp.allclose(out, ref, rtol=1e-4, atol=1e-5):
        err = float(jnp.max(jnp.abs(out - ref)))
        raise AssertionError(f"Pallas output differs from reference (max abs err {err})")

    print("KERNEL_OK")
</pallas_src>

<mosaic_0001>
module attributes {stable_mosaic.version = 11 : i64} {
  func.func @_from_image_kernel(%arg0: i32, %arg1: i32, %arg2: memref<1x3x256xf32, #tpu.memory_space<vmem>>, %arg3: memref<32x3xf32, #tpu.memory_space<vmem>>, %arg4: memref<32x1xf32, #tpu.memory_space<vmem>>, %arg5: memref<1x32x256xf32, #tpu.memory_space<vmem>>) attributes {dimension_semantics = [#tpu.dimension_semantics<parallel>, #tpu.dimension_semantics<parallel>], iteration_bounds = array<i64: 2, 1>, scalar_prefetch = 0 : i64, scratch_operands = 0 : i64, tpu.core_type = #tpu.core_type<tc>, window_params = [{transform_indices = @transform_0, window_bounds = array<i64: 1, 3, 256>}, {pipeline_mode = #tpu.pipeline_mode<synchronous>, transform_indices = @transform_1, window_bounds = array<i64: 32, 3>}, {pipeline_mode = #tpu.pipeline_mode<synchronous>, transform_indices = @transform_2, window_bounds = array<i64: 32, 1>}, {transform_indices = @transform_3, window_bounds = array<i64: 1, 32, 256>}]} {
    %c0 = arith.constant 0 : index
    %c0_0 = arith.constant 0 : index
    %0 = vector.load %arg3[%c0, %c0_0] : memref<32x3xf32, #tpu.memory_space<vmem>>, vector<32x3xf32>
    %c0_1 = arith.constant 0 : index
    %c0_2 = arith.constant 0 : index
    %c0_3 = arith.constant 0 : index
    %1 = vector.load %arg2[%c0_1, %c0_2, %c0_3] : memref<1x3x256xf32, #tpu.memory_space<vmem>>, vector<1x3x256xf32>
    %2 = vector.shape_cast %1 : vector<1x3x256xf32> to vector<3x256xf32>
    %cst = arith.constant dense<0.000000e+00> : vector<32x256xf32>
    %3 = tpu.matmul %0, %2, %cst {dimension_numbers = #tpu.dot_dimension_numbers<[1], [0], [0], [1], [0, 0, 1, 1], [], []>} : vector<32x3xf32>, vector<3x256xf32>, vector<32x256xf32> -> vector<32x256xf32>
    %c0_4 = arith.constant 0 : index
    %c0_5 = arith.constant 0 : index
    %4 = vector.load %arg4[%c0_4, %c0_5] : memref<32x1xf32, #tpu.memory_space<vmem>>, vector<32x1xf32>
    %5 = vector.broadcast %4 : vector<32x1xf32> to vector<32x256xf32>
    %6 = arith.addf %3, %5 : vector<32x256xf32>
    %c0_6 = arith.constant 0 : index
    %c0_7 = arith.constant 0 : index
    %c0_8 = arith.constant 0 : index
    %7 = vector.load %arg5[%c0_6, %c0_7, %c0_8] : memref<1x32x256xf32, #tpu.memory_space<vmem>>, vector<1x32x256xf32>
    %8 = vector.shape_cast %7 : vector<1x32x256xf32> to vector<32x256xf32>
    %9 = vector.shape_cast %6 : vector<32x256xf32> to vector<1x32x256xf32>
    tpu.vector_store %arg5[%c0_6, %c0_7, %c0_8], %9 {strides = array<i32>} : memref<1x32x256xf32, #tpu.memory_space<vmem>>, vector<1x32x256xf32>,
    return
  }
  func.func @transform_0(%arg0: i32, %arg1: i32) -> (i32, i32, i32) {
    %c0_i32 = arith.constant 0 : i32
    %c0_i32_0 = arith.constant 0 : i32
    return %arg0, %c0_i32, %arg1 : i32, i32, i32
  }
  func.func @transform_1(%arg0: i32, %arg1: i32) -> (i32, i32) {
    %c0_i32 = arith.constant 0 : i32
    %c0_i32_0 = arith.constant 0 : i32
    %c0_i32_1 = arith.constant 0 : i32
    return %c0_i32, %c0_i32_0 : i32, i32
  }
  func.func @transform_2(%arg0: i32, %arg1: i32) -> (i32, i32) {
    %c0_i32 = arith.constant 0 : i32
    %c0_i32_0 = arith.constant 0 : i32
    %c0_i32_1 = arith.constant 0 : i32
    return %c0_i32, %c0_i32_0 : i32, i32
  }
  func.func @transform_3(%arg0: i32, %arg1: i32) -> (i32, i32, i32) {
    %c0_i32 = arith.constant 0 : i32
    %c0_i32_0 = arith.constant 0 : i32
    return %arg0, %c0_i32, %arg1 : i32, i32, i32
  }
}

</mosaic_0001>

<bundles_post_ra>
// kernel: from_image_forward.1
= control target key start
LH: loop header
LB: loop body
LE: loop exit
PB: predicated region body
PF: predicated region fallthrough
CT: control target
= control target key end

     0   :  { %s539_s12 = smov 0   ;;  %s541_s13 = smov 0   ;;  %s600_s0 = inlined_call_operand.vmem [shape: f32[2,3,256], index: 0, kind: input, shape index: {}]   ;;  %s601_s1 = inlined_call_operand.vmem [shape: f32[32,3], index: 1, kind: input, shape index: {}]   ;;  %s602_s2 = inlined_call_operand.vmem [shape: f32[32,1], index: 2, kind: input, shape index: {}]   ;;  %s603_s3 = inlined_call_operand.vmem [shape: f32[2,32,256], index: 3, kind: output, shape index: {}]  }
   0x1   :  { %s543_s14 = smov 0  }
   0x2 LB: > { %s25_s15 = sadd.s32 1, %s511_s13  ;;  %p447_p0 = scmp.ge.s32.totalorder %s515_s14, 1  ;;  %s515_s14 = sphi %s543_s14, %s13_s14   ;;  %s511_s13 = sphi %s541_s13, %s605_s13   ;;  %s507_s12 = sphi %s539_s12, %s604_s12  }
   0x3   : > { %p27_p1 = scmp.ge.s32.totalorder %s25_s15, 2  ;;  %p158_p2 = scmp.lt.s32.totalorder %s515_s14, 3 }
   0x5   : > { %s607_s15 = smov (%p27_p1, %s25_s15), 0  ;;  %p159_p3 = pnand %p447_p0, %p158_p2 }
   0x6   : > { %p191_p4 = scmp.lt.s32.totalorder (!%p159_p3), %s507_s12, 1 }
   0x7   : > { %162 = sbr.rel (%p159_p3) target bundleno = 223 (0xdf), region = 32 }
   0xc   : > { %v517_v0 = vmov 0.0   ;;  %v217_v1 = vld [vmem:[%s602_s2 + $0x10] sm:$0xff]  ;;  %s609_s12 = smov (!%p191_p4, %s507_s12), 1  ;;  %v518_v2 = vmov 0   ;;  %v215_v3 = vld [vmem:[%s602_s2] sm:$0xff]  ;;  %v218_v4 = vld [vmem:[%s602_s2 + $0x18] sm:$0xff] }
   0xd   : > { %323 = vmatprep.mubr.f32.mxu0 %v517_v0  ;;  %335 = vmatprep.mubr.f32.mxu1 %v517_v0  ;;  %s460_s20 = sshll.u32 %s609_s12, 3  ;;  %v216_v5 = vld [vmem:[%s602_s2 + $0x8] sm:$0xff]  ;;  %vm254_vm0 = vcmask 1042432   ;;  %v210_v8 = vld [vmem:[%s601_s1] sm:$0xff]  ;;  %vm241_vm1 = vcmask 23552   ;;  %v212_v9 = vld [vmem:[%s601_s1 + $0x10] sm:$0xff] }
   0xe   : > { %491 = vset.pattern.permute.xlu1 %v518_v2  ;;  %490 = vset.pattern.permute.xlu0 %v518_v2  ;;  %s198_s27 = scalar_lea.vmem %s600_s0, %s460_s20  ;;  %v211_v10 = vld [vmem:[%s601_s1 + $0x8] sm:$0xff]  ;;  %v213_v11 = vld [vmem:[%s601_s1 + $0x18] sm:$0xff]  ;;  %s461_s9 = sshll.u32 %s609_s12, 6 }
   0xf   : > { %231 = vperm.xlu1 %491, %v217_v1   ;;  %221 = vperm.xlu0 %490, %v215_v3   ;;  %v214_v6 = vld [vmem:[%s198_s27] sm:$0x77]  ;;  %s208_s16 = scalar_lea.vmem %s603_s3, %s461_s9 }
  0x10   : > { %v240_v7 = vcombine.high %v214_v6, %v214_v6 }
  0x12   : > { %452 = vmatprep.subr.msk.mxu0 %vm254_vm0, %v240_v7  ;;  %462 = vmatprep.subr.msk.mxu1 %vm254_vm0, %v240_v7 }
  0x13   : > { %236 = vperm.xlu1 %491, %v218_v4   ;;  %226 = vperm.xlu0 %490, %v216_v5  }
  0x14   : > { %453 = vmatpush1.msk.msra.mxu0 %vm254_vm0, %v214_v6  ;;  %463 = vmatpush1.msk.msra.mxu1 %vm254_vm0, %v214_v6 }
  0x15   : > { %454 = vmatmul.mubr.msk.f32.vlgmr.msra.gmra.mxu0 %vm241_vm1, %v210_v8  ;;  %456 = vmatmul.mubr.msk.f32.vlgmr.msra.gmra.mxu1 %vm241_vm1, %v212_v9 }
  0x16   : > { %329 = vmatprep.mubr.f32.mxu0 %v517_v0  ;;  %341 = vmatprep.mubr.f32.mxu1 %v517_v0 }
  0x19   : > { %455 = vmatmul.mubr.msk.f32.gmra.mxu0 %vm241_vm1, %v211_v10  ;;  %457 = vmatmul.mubr.msk.f32.gmra.mxu1 %vm241_vm1, %v213_v11 }
  0x8a   : > { %v232_v12 = vpop.permute.xlu1 %231  ;;  %v222_v13 = vpop.permute.xlu0 %221 }
  0x8e   : > { %v237_v20 = vpop.permute.xlu1 %236  ;;  %v227_v21 = vpop.permute.xlu0 %226 }
  0xd5   : > { %v325_v14 = vpop.f32.mrf.mxu0  ;;  %v337_v15 = vpop.f32.mrf.mxu1 }
  0xd6   : > { %v326_v16 = vadd.f32 %v325_v14, %v222_v13  ;;  %v338_v17 = vadd.f32 %v337_v15, %v232_v12 }
  0xd7   : > { %v327_v18 = vpop.f32.mrf.mxu0  ;;  %v339_v19 = vpop.f32.mrf.mxu1 }
  0xd8   : > { %348 = vst [vmem:[%s208_s16] sm:$0xff] %v326_v16  ;;  %352 = vst [vmem:[%s208_s16 + $0x20] sm:$0xff] %v338_v17  ;;  %v328_v22 = vadd.f32 %v327_v18, %v222_v13  ;;  %v340_v23 = vadd.f32 %v339_v19, %v232_v12 }
  0xd9   : > { %v331_v24 = vpop.f32.mrf.mxu0  ;;  %v343_v25 = vpop.f32.mrf.mxu1 }
  0xda   : > { %349 = vst [vmem:[%s208_s16 + $0x8] sm:$0xff] %v328_v22  ;;  %353 = vst [vmem:[%s208_s16 + $0x28] sm:$0xff] %v340_v23  ;;  %v332_v26 = vadd.f32 %v331_v24, %v227_v21  ;;  %v344_v27 = vadd.f32 %v343_v25, %v237_v20 }
  0xdb   : > { %v333_v28 = vpop.f32.mrf.mxu0  ;;  %v345_v29 = vpop.f32.mrf.mxu1 }
  0xdc   : > { %350 = vst [vmem:[%s208_s16 + $0x10] sm:$0xff] %v332_v26  ;;  %354 = vst [vmem:[%s208_s16 + $0x30] sm:$0xff] %v344_v27  ;;  %v334_v30 = vadd.f32 %v333_v28, %v227_v21  ;;  %v346_v31 = vadd.f32 %v345_v29, %v237_v20 }
  0xde   : > { %351 = vst [vmem:[%s208_s16 + $0x18] sm:$0xff] %v334_v30  ;;  %355 = vst [vmem:[%s208_s16 + $0x38] sm:$0xff] %v346_v31 }
  0xdf PF: > { %s13_s14 = sadd.s32 1, %s515_s14   ;;  %s604_s12 = smov %s511_s13 }
  0xe0   : > { %p10_p5 = scmp.ge.s32.totalorder %s13_s14, 4   ;;  %s605_s13 = smov %s607_s15 }
  0xe2   :  { %12 = sbr.rel (!%p10_p5) target bundleno = 2 (0x2), region = 62 }

</bundles_post_ra>
